<compile_context>
chip_gen: v6e
topology: v6e:2x2x1
jax: 0.10.0
libtpu: 0.0.40
codegen_flags: <defaults>
</compile_context>

<pallas_src>
import functools

import jax
import jax.numpy as jnp
from jax.experimental import pallas as pl
from jax.experimental.pallas import tpu as pltpu

DIMS = [100, 75, 50, 25, 1]


def _round_up(v, m):
    return ((v + m - 1) // m) * m


def mlp_kernel(x_ref,
               w1_ref, b1_ref,
               w2_ref, b2_ref,
               w3_ref, b3_ref,
               w4_ref, b4_ref,
               o_ref, *, mxu_dtype):
    # Whole MLP hot path for one batch tile: 3 MXU matmuls with mxu_dtype operands and
    # f32 accumulation; bias + ReLU on the VPU in f32; final 25->1 layer on VPU + XLU.
    # Operand casts happen in-kernel (free on the VPU) so x never needs an HBM copy.
    x = x_ref[...].astype(mxu_dtype)

    h1 = jnp.dot(x, w1_ref[...], preferred_element_type=jnp.float32) + b1_ref[...]
    h1 = jnp.maximum(h1, 0.0)

    h2 = jnp.dot(h1.astype(mxu_dtype), w2_ref[...],
                 preferred_element_type=jnp.float32) + b2_ref[...]
    h2 = jnp.maximum(h2, 0.0)

    h3 = jnp.dot(h2.astype(mxu_dtype), w3_ref[...],
                 preferred_element_type=jnp.float32) + b3_ref[...]
    h3 = jnp.maximum(h3, 0.0)

    # Layer 4 (25 -> 1): N=1 MXU pass is ~0.2% useful; do it on the VPU/XLU instead.
    # w4_ref is the (1, 25) weight row (f32), b4_ref is (1, 1).
    h4 = jnp.sum(h3 * w4_ref[...], axis=-1, keepdims=True) + b4_ref[...]

    o_ref[...] = h4.astype(o_ref.dtype)


def student_e_forward(x, params, *, block_b=4096, mxu_dtype=jnp.bfloat16):
    """x: (B, 100) float32; params: list of ((in, out) weight, (1, out) bias) f32."""
    B = x.shape[0]
    (w1, b1), (w2, b2), (w3, b3), (w4, b4) = params

    # Final layer handled on the VPU: expose w4 as a (1, 25) f32 row.
    w4_row = w4.reshape(1, -1).astype(jnp.float32)
    b4 = b4.astype(jnp.float32)

    # MXU-operand dtype for the three big matmuls. Weights are tiny (~25 KB) and
    # VMEM-resident, so a one-time wrapper cast is negligible; x is NOT cast in the
    # wrapper (it is streamed f32 and cast in-kernel to avoid an extra HBM round-trip).
    w1d = w1.astype(mxu_dtype)
    w2d = w2.astype(mxu_dtype)
    w3d = w3.astype(mxu_dtype)
    b1 = b1.astype(jnp.float32)
    b2 = b2.astype(jnp.float32)
    b3 = b3.astype(jnp.float32)

    # Batch tile: multiple of 16 (bf16 sublane packing), large to amortize grid-step
    # overhead, but capped at ~B/2 so there are >=2 grid steps for v7x's 2 TCs.
    half_b = _round_up(max(pl.cdiv(B, 2), 16), 16)
    TB = max(16, min(block_b, half_b))
    assert TB % 16 == 0
    grid = (pl.cdiv(B, TB),)

    # Weights/biases: full-array blocks, constant index_map -> VMEM-resident across
    # all grid steps (only the x stream / output are re-DMA'd per tile).
    def resident(arr):
        return pl.BlockSpec(arr.shape, lambda i: (0,) * arr.ndim)

    w_itemsize = jnp.dtype(mxu_dtype).itemsize
    weight_bytes = (w1d.size + w2d.size + w3d.size) * w_itemsize \
        + (b1.size + b2.size + b3.size + w4_row.size + b4.size) * 4

    # Explicit VMEM budget: 2x (x double-buffer + f32 intermediates + MXU-operand
    # copies + lane-padded output double-buffer + resident weights), clamped to a
    # range safe on every generation (v5e 128 MiB, v6e 128 MiB, v7x 64 MiB physical).
    x_buf_bytes = 2 * TB * DIMS[0] * 4
    act_bytes = TB * (DIMS[1] + DIMS[2] + DIMS[3]) * (4 + w_itemsize)
    out_buf_bytes = 2 * TB * 128 * 4          # (TB, 1) f32 pads to 128 lanes
    vmem_limit = int(min(48 << 20,
                         max(32 << 20,
                             2 * (x_buf_bytes + act_bytes + out_buf_bytes
                                  + 2 * weight_bytes))))

    cost = pl.CostEstimate(
        flops=2 * B * sum(DIMS[i] * DIMS[i + 1] for i in range(4)),
        transcendentals=0,
        bytes_accessed=int(B * DIMS[0] * 4 + B * 4 + weight_bytes),
    )

    kernel = functools.partial(mlp_kernel, mxu_dtype=mxu_dtype)

    return pl.pallas_call(
        kernel,
        out_shape=jax.ShapeDtypeStruct((B, 1), jnp.float32),
        grid=grid,
        in_specs=[
            pl.BlockSpec((TB, DIMS[0]), lambda i: (i, 0)),   # x: batch-tiled f32 stream
            resident(w1d), resident(b1),
            resident(w2d), resident(b2),
            resident(w3d), resident(b3),
            resident(w4_row), resident(b4),
        ],
        out_specs=pl.BlockSpec((TB, 1), lambda i: (i, 0)),
        compiler_params=pltpu.CompilerParams(
            dimension_semantics=("parallel",),   # shards batch across v7x's 2 TCs
            vmem_limit_bytes=vmem_limit,
        ),
        cost_estimate=cost,
    )(x, w1d, b1, w2d, b2, w3d, b3, w4_row, b4)


def init_params(key):
    """Xavier-normal weights (as in StudentE.init_weights), zero biases.
    Weights stored as (in, out); xavier std is symmetric in fan_in/fan_out."""
    params = []
    for i in range(4):
        fan_in, fan_out = DIMS[i], DIMS[i + 1]
        key, sub = jax.random.split(key)
        std = (2.0 / (fan_in + fan_out)) ** 0.5
        w = std * jax.random.normal(sub, (fan_in, fan_out), dtype=jnp.float32)
        b = jnp.zeros((1, fan_out), dtype=jnp.float32)
        params.append((w, b))
    return params


def reference_forward(x, params, mxu_dtype=jnp.float32):
    """Pure-JAX reference mirroring the kernel's numerics (mxu_dtype matmul operands,
    f32 accumulate, f32 bias/ReLU, final layer as multiply + row-sum)."""
    (w1, b1), (w2, b2), (w3, b3), (w4, b4) = params
    h = x
    for w, b in ((w1, b1), (w2, b2), (w3, b3)):
        h = jnp.dot(h.astype(mxu_dtype), w.astype(mxu_dtype),
                    preferred_element_type=jnp.float32) + b
        h = jnp.maximum(h, 0.0)
    return jnp.sum(h * w4.reshape(1, -1), axis=-1, keepdims=True) + b4


if __name__ == "__main__":
    key = jax.random.PRNGKey(0)
    key, xkey = jax.random.split(key)
    params = init_params(key)

    # --- Small case (single tile), exact-f32 path. ---
    B = 8
    x = jax.random.normal(xkey, (B, 100), dtype=jnp.float32)
    out = jax.block_until_ready(student_e_forward(x, params, mxu_dtype=jnp.float32))
    ref = reference_forward(x, params, mxu_dtype=jnp.float32)
    assert out.shape == (B, 1), out.shape
    assert jnp.allclose(out, ref, atol=1e-4, rtol=1e-4), "f32 single-tile mismatch"

    # --- Multi-tile + ragged last tile (4 tiles, last partial), exact-f32 path. ---
    key, xkey2 = jax.random.split(key)
    B2 = 200
    x2 = jax.random.normal(xkey2, (B2, 100), dtype=jnp.float32)
    out2 = jax.block_until_ready(
        student_e_forward(x2, params, block_b=64, mxu_dtype=jnp.float32))
    ref2 = reference_forward(x2, params, mxu_dtype=jnp.float32)
    assert out2.shape == (B2, 1), out2.shape
    assert jnp.allclose(out2, ref2, atol=1e-4, rtol=1e-4), "f32 multi-tile mismatch"

    # --- Default path: bf16 MXU operands (in-kernel cast), f32 storage/accumulate. ---
    out_bf16 = jax.block_until_ready(student_e_forward(x2, params, block_b=64))
    ref_bf16 = reference_forward(x2, params, mxu_dtype=jnp.bfloat16)
    ref_f32 = reference_forward(x2, params, mxu_dtype=jnp.float32)
    assert jnp.allclose(out_bf16, ref_bf16, atol=1e-2, rtol=1e-2), "bf16 mirror mismatch"
    assert jnp.allclose(out_bf16, ref_f32, atol=1e-1, rtol=1e-1), "bf16 semantics drift"

    # --- Default TB selection (>=2 grid steps: B=1000 -> TB=512, grid=(2,)). ---
    key, xkey3 = jax.random.split(key)
    B3 = 1000
    x3 = jax.random.normal(xkey3, (B3, 100), dtype=jnp.float32)
    out3 = jax.block_until_ready(student_e_forward(x3, params))
    ref3 = reference_forward(x3, params, mxu_dtype=jnp.bfloat16)
    assert out3.shape == (B3, 1), out3.shape
    assert jnp.allclose(out3, ref3, atol=1e-2, rtol=1e-2), "default-TB bf16 mismatch"

    print("KERNEL_OK")
</pallas_src>

<mosaic_0001>
module attributes {stable_mosaic.version = 11 : i64} {
  func.func @mlp_kernel(%arg0: i32, %arg1: memref<16x100xf32, #tpu.memory_space<vmem>>, %arg2: memref<100x75xf32, #tpu.memory_space<vmem>>, %arg3: memref<1x75xf32, #tpu.memory_space<vmem>>, %arg4: memref<75x50xf32, #tpu.memory_space<vmem>>, %arg5: memref<1x50xf32, #tpu.memory_space<vmem>>, %arg6: memref<50x25xf32, #tpu.memory_space<vmem>>, %arg7: memref<1x25xf32, #tpu.memory_space<vmem>>, %arg8: memref<1x25xf32, #tpu.memory_space<vmem>>, %arg9: memref<1x1xf32, #tpu.memory_space<vmem>>, %arg10: memref<16x1xf32, #tpu.memory_space<vmem>>) attributes {dimension_semantics = [#tpu.dimension_semantics<parallel>], iteration_bounds = array<i64: 1>, scalar_prefetch = 0 : i64, scratch_operands = 0 : i64, tpu.core_type = #tpu.core_type<tc>, window_params = [{transform_indices = @transform_0, window_bounds = array<i64: 16, 100>}, {pipeline_mode = #tpu.pipeline_mode<synchronous>, transform_indices = @transform_1, window_bounds = array<i64: 100, 75>}, {pipeline_mode = #tpu.pipeline_mode<synchronous>, transform_indices = @transform_2, window_bounds = array<i64: 1, 75>}, {pipeline_mode = #tpu.pipeline_mode<synchronous>, transform_indices = @transform_3, window_bounds = array<i64: 75, 50>}, {pipeline_mode = #tpu.pipeline_mode<synchronous>, transform_indices = @transform_4, window_bounds = array<i64: 1, 50>}, {pipeline_mode = #tpu.pipeline_mode<synchronous>, transform_indices = @transform_5, window_bounds = array<i64: 50, 25>}, {pipeline_mode = #tpu.pipeline_mode<synchronous>, transform_indices = @transform_6, window_bounds = array<i64: 1, 25>}, {pipeline_mode = #tpu.pipeline_mode<synchronous>, transform_indices = @transform_7, window_bounds = array<i64: 1, 25>}, {pipeline_mode = #tpu.pipeline_mode<synchronous>, transform_indices = @transform_8, window_bounds = array<i64: 1, 1>}, {transform_indices = @transform_9, window_bounds = array<i64: 16, 1>}]} {
    %c0 = arith.constant 0 : index
    %c0_0 = arith.constant 0 : index
    %0 = vector.load %arg1[%c0, %c0_0] : memref<16x100xf32, #tpu.memory_space<vmem>>, vector<16x100xf32>
    %c0_1 = arith.constant 0 : index
    %c0_2 = arith.constant 0 : index
    %1 = vector.load %arg2[%c0_1, %c0_2] : memref<100x75xf32, #tpu.memory_space<vmem>>, vector<100x75xf32>
    %cst = arith.constant dense<0.000000e+00> : vector<16x75xf32>
    %2 = tpu.matmul %0, %1, %cst {dimension_numbers = #tpu.dot_dimension_numbers<[1], [0], [0], [1], [0, 0, 1, 1], [], []>} : vector<16x100xf32>, vector<100x75xf32>, vector<16x75xf32> -> vector<16x75xf32>
    %c0_3 = arith.constant 0 : index
    %c0_4 = arith.constant 0 : index
    %3 = vector.load %arg3[%c0_3, %c0_4] : memref<1x75xf32, #tpu.memory_space<vmem>>, vector<1x75xf32>
    %4 = vector.broadcast %3 : vector<1x75xf32> to vector<16x75xf32>
    %5 = arith.addf %2, %4 : vector<16x75xf32>
    %cst_5 = arith.constant 0.000000e+00 : f32
    %6 = vector.broadcast %cst_5 : f32 to vector<16x75xf32>
    %7 = arith.maximumf %5, %6 : vector<16x75xf32>
    %c0_6 = arith.constant 0 : index
    %c0_7 = arith.constant 0 : index
    %8 = vector.load %arg4[%c0_6, %c0_7] : memref<75x50xf32, #tpu.memory_space<vmem>>, vector<75x50xf32>
    %cst_8 = arith.constant dense<0.000000e+00> : vector<16x50xf32>
    %9 = tpu.matmul %7, %8, %cst_8 {dimension_numbers = #tpu.dot_dimension_numbers<[1], [0], [0], [1], [0, 0, 1, 1], [], []>} : vector<16x75xf32>, vector<75x50xf32>, vector<16x50xf32> -> vector<16x50xf32>
    %c0_9 = arith.constant 0 : index
    %c0_10 = arith.constant 0 : index
    %10 = vector.load %arg5[%c0_9, %c0_10] : memref<1x50xf32, #tpu.memory_space<vmem>>, vector<1x50xf32>
    %11 = vector.broadcast %10 : vector<1x50xf32> to vector<16x50xf32>
    %12 = arith.addf %9, %11 : vector<16x50xf32>
    %cst_11 = arith.constant 0.000000e+00 : f32
    %13 = vector.broadcast %cst_11 : f32 to vector<16x50xf32>
    %14 = arith.maximumf %12, %13 : vector<16x50xf32>
    %c0_12 = arith.constant 0 : index
    %c0_13 = arith.constant 0 : index
    %15 = vector.load %arg6[%c0_12, %c0_13] : memref<50x25xf32, #tpu.memory_space<vmem>>, vector<50x25xf32>
    %cst_14 = arith.constant dense<0.000000e+00> : vector<16x25xf32>
    %16 = tpu.matmul %14, %15, %cst_14 {dimension_numbers = #tpu.dot_dimension_numbers<[1], [0], [0], [1], [0, 0, 1, 1], [], []>} : vector<16x50xf32>, vector<50x25xf32>, vector<16x25xf32> -> vector<16x25xf32>
    %c0_15 = arith.constant 0 : index
    %c0_16 = arith.constant 0 : index
    %17 = vector.load %arg7[%c0_15, %c0_16] : memref<1x25xf32, #tpu.memory_space<vmem>>, vector<1x25xf32>
    %18 = vector.broadcast %17 : vector<1x25xf32> to vector<16x25xf32>
    %19 = arith.addf %16, %18 : vector<16x25xf32>
    %cst_17 = arith.constant 0.000000e+00 : f32
    %20 = vector.broadcast %cst_17 : f32 to vector<16x25xf32>
    %21 = arith.maximumf %19, %20 : vector<16x25xf32>
    %c0_18 = arith.constant 0 : index
    %c0_19 = arith.constant 0 : index
    %22 = vector.load %arg8[%c0_18, %c0_19] : memref<1x25xf32, #tpu.memory_space<vmem>>, vector<1x25xf32>
    %23 = vector.broadcast %22 : vector<1x25xf32> to vector<16x25xf32>
    %24 = arith.mulf %21, %23 : vector<16x25xf32>
    %cst_20 = arith.constant dense<0.000000e+00> : vector<16xf32>
    %25 = vector.multi_reduction <add>, %24, %cst_20 [1] : vector<16x25xf32> to vector<16xf32>
    %26 = vector.shape_cast %25 : vector<16xf32> to vector<16x1xf32>
    %c0_21 = arith.constant 0 : index
    %c0_22 = arith.constant 0 : index
    %27 = vector.load %arg9[%c0_21, %c0_22] : memref<1x1xf32, #tpu.memory_space<vmem>>, vector<1x1xf32>
    %28 = vector.broadcast %27 : vector<1x1xf32> to vector<16x1xf32>
    %29 = arith.addf %26, %28 : vector<16x1xf32>
    %c0_23 = arith.constant 0 : index
    %c0_24 = arith.constant 0 : index
    %30 = vector.load %arg10[%c0_23, %c0_24] : memref<16x1xf32, #tpu.memory_space<vmem>>, vector<16x1xf32>
    tpu.vector_store %arg10[%c0_23, %c0_24], %29 {strides = array<i32>} : memref<16x1xf32, #tpu.memory_space<vmem>>, vector<16x1xf32>,
    return
  }
  func.func @transform_0(%arg0: i32) -> (i32, i32) {
    %c0_i32 = arith.constant 0 : i32
    %c0_i32_0 = arith.constant 0 : i32
    return %arg0, %c0_i32 : i32, i32
  }
  func.func @transform_1(%arg0: i32) -> (i32, i32) {
    %c0_i32 = arith.constant 0 : i32
    %c0_i32_0 = arith.constant 0 : i32
    %c0_i32_1 = arith.constant 0 : i32
    return %c0_i32, %c0_i32_0 : i32, i32
  }
  func.func @transform_2(%arg0: i32) -> (i32, i32) {
    %c0_i32 = arith.constant 0 : i32
    %c0_i32_0 = arith.constant 0 : i32
    %c0_i32_1 = arith.constant 0 : i32
    return %c0_i32, %c0_i32_0 : i32, i32
  }
  func.func @transform_3(%arg0: i32) -> (i32, i32) {
    %c0_i32 = arith.constant 0 : i32
    %c0_i32_0 = arith.constant 0 : i32
    %c0_i32_1 = arith.constant 0 : i32
    return %c0_i32, %c0_i32_0 : i32, i32
  }
  func.func @transform_4(%arg0: i32) -> (i32, i32) {
    %c0_i32 = arith.constant 0 : i32
    %c0_i32_0 = arith.constant 0 : i32
    %c0_i32_1 = arith.constant 0 : i32
    return %c0_i32, %c0_i32_0 : i32, i32
  }
  func.func @transform_5(%arg0: i32) -> (i32, i32) {
    %c0_i32 = arith.constant 0 : i32
    %c0_i32_0 = arith.constant 0 : i32
    %c0_i32_1 = arith.constant 0 : i32
    return %c0_i32, %c0_i32_0 : i32, i32
  }
  func.func @transform_6(%arg0: i32) -> (i32, i32) {
    %c0_i32 = arith.constant 0 : i32
    %c0_i32_0 = arith.constant 0 : i32
    %c0_i32_1 = arith.constant 0 : i32
    return %c0_i32, %c0_i32_0 : i32, i32
  }
  func.func @transform_7(%arg0: i32) -> (i32, i32) {
    %c0_i32 = arith.constant 0 : i32
    %c0_i32_0 = arith.constant 0 : i32
    %c0_i32_1 = arith.constant 0 : i32
    return %c0_i32, %c0_i32_0 : i32, i32
  }
  func.func @transform_8(%arg0: i32) -> (i32, i32) {
    %c0_i32 = arith.constant 0 : i32
    %c0_i32_0 = arith.constant 0 : i32
    %c0_i32_1 = arith.constant 0 : i32
    return %c0_i32, %c0_i32_0 : i32, i32
  }
  func.func @transform_9(%arg0: i32) -> (i32, i32) {
    %c0_i32 = arith.constant 0 : i32
    %c0_i32_0 = arith.constant 0 : i32
    return %arg0, %c0_i32 : i32, i32
  }
}

</mosaic_0001>

<bundles_post_ra>
// kernel: tpu_custom_call.1
= control target key start
LH: loop header
LB: loop body
LE: loop exit
PB: predicated region body
PF: predicated region fallthrough
CT: control target
= control target key end

     0   :  { %s705_s0 = inlined_call_operand.vmem [shape: f32[8,100], index: 0, kind: input, shape index: {}]   ;;  %s706_s1 = inlined_call_operand.vmem [shape: f32[100,75], index: 1, kind: input, shape index: {}]   ;;  %s707_s2 = inlined_call_operand.vmem [shape: f32[1,75], index: 2, kind: input, shape index: {}]   ;;  %s708_s3 = inlined_call_operand.vmem [shape: f32[75,50], index: 3, kind: input, shape index: {}]   ;;  %s709_s4 = inlined_call_operand.vmem [shape: f32[1,50], index: 4, kind: input, shape index: {}]   ;;  %s710_s5 = inlined_call_operand.vmem [shape: f32[50,25], index: 5, kind: input, shape index: {}]   ;;  %s711_s6 = inlined_call_operand.vmem [shape: f32[1,25], index: 6, kind: input, shape index: {}]   ;;  %s712_s7 = inlined_call_operand.vmem [shape: f32[1,25], index: 7, kind: input, shape index: {}]   ;;  %s713_s8 = inlined_call_operand.<no memory space> [shape: f32[1,1], index: 8, kind: input, shape index: {}]   ;;  %s714_s9 = inlined_call_operand.vmem [shape: f32[8,1], index: 9, kind: output, shape index: {}]  }
   0x1   :  { %v14_v0 = vstv %s713_s8 }
   0x2   :  { %15 = vst [vmem:[#allocation2] sm:$0x1] %v14_v0 }
   0x3   :  { %v48_v1 = vld [vmem:[%s706_s1 + $0x60] sm:$0xf]  ;;  %vm63_vm0 = vcmask 1043456   ;;  %v47_v2 = vld [vmem:[%s706_s1 + $0x58] sm:$0xff]  ;;  %v46_v3 = vld [vmem:[%s706_s1 + $0x50] sm:$0xff]  ;;  %vm56_vm1 = vcmask 818176  }
   0x4   :  { %470 = vmatprep.subr.msk.mxu0 %vm63_vm0, %v48_v1  ;;  %vm168_vm2 = vcmask 1042432   ;;  %v45_v4 = vld [vmem:[%s706_s1 + $0x48] sm:$0xff]  ;;  %v34_v5 = vld [vmem:[%s705_s0] sm:$0xff]  ;;  %v151_v9 = vld [vmem:[%s708_s3 + $0x38] sm:$0xff]  ;;  %vm270_vm3 = vcmask 1041408   ;;  %vm161_vm4 = vcmask 613376  }
   0x5   :  { %471 = vmatpush3.msk.msra.mxu0 %vm63_vm0, %v48_v1  ;;  %496 = vmatprep.mubr.msk.f32.mxu0 %vm56_vm1, %v34_v5  ;;  %v153_v6 = vld [vmem:[%s708_s3 + $0x48] sm:$0x7]  ;;  %v152_v7 = vld [vmem:[%s708_s3 + $0x40] sm:$0xff]  ;;  %v43_v10 = vld [vmem:[%s706_s1 + $0x38] sm:$0xff]  ;;  %vm263_vm5 = vcmask 408576   ;;  %vm360_vm6 = vcmask 203776  }
   0x6   :  { %472 = vmatprep.subr.mxu0 %v47_v2  ;;  %v44_v8 = vld [vmem:[%s706_s1 + $0x40] sm:$0xff]  ;;  %499 = vmatprep.subr.msk.mxu1 %vm168_vm2, %v153_v6  ;;  %v150_v11 = vld [vmem:[%s708_s3 + $0x30] sm:$0xff]  ;;  %v149_v13 = vld [vmem:[%s708_s3 + $0x28] sm:$0xff]  ;;  %vm376_vm7 = vcmask 7168  }
   0x7   :  { %473 = vmatpush3.msra.mxu0 %v47_v2  ;;  %500 = vmatpush3.msk.msra.mxu1 %vm168_vm2, %v153_v6  ;;  %v42_v12 = vld [vmem:[%s706_s1 + $0x30] sm:$0xff]  ;;  %v41_v14 = vld [vmem:[%s706_s1 + $0x28] sm:$0xff]  ;;  %v148_v15 = vld [vmem:[%s708_s3 + $0x20] sm:$0xff] }
   0x8   :  { %474 = vmatprep.subr.mxu0 %v46_v3  ;;  %501 = vmatprep.subr.mxu1 %v152_v7  ;;  %v40_v16 = vld [vmem:[%s706_s1 + $0x20] sm:$0xff]  ;;  %v39_v17 = vld [vmem:[%s706_s1 + $0x18] sm:$0xff]  ;;  %v38_v18 = vld [vmem:[%s706_s1 + $0x10] sm:$0xff] }
   0x9   :  { %475 = vmatpush3.msra.mxu0 %v46_v3  ;;  %502 = vmatpush3.msra.mxu1 %v152_v7  ;;  %v37_v19 = vld [vmem:[%s706_s1 + $0x8] sm:$0xff]  ;;  %v36_v20 = vld [vmem:[%s706_s1] sm:$0xff]  ;;  %v147_v22 = vld [vmem:[%s708_s3 + $0x18] sm:$0xff] }
   0xa   :  { %476 = vmatprep.subr.mxu0 %v45_v4  ;;  %503 = vmatprep.subr.mxu1 %v151_v9  ;;  %v35_v21 = vld [vmem:[%s705_s0 + $0x8] sm:$0xff]  ;;  %v146_v23 = vld [vmem:[%s708_s3 + $0x10] sm:$0xff]  ;;  %v144_v25 = vld [vmem:[%s708_s3] sm:$0xff] }
   0xb   :  { %477 = vmatpush3.msra.mxu0 %v45_v4  ;;  %504 = vmatpush3.msra.mxu1 %v151_v9  ;;  %v145_v24 = vld [vmem:[%s708_s3 + $0x8] sm:$0xff]  ;;  %v255_v26 = vld [vmem:[%s710_s5 + $0x30] sm:$0x3]  ;;  %v420_v27 = vld [vmem:[%s707_s2] ss:$0 sm:$0xff] }
   0xc   :  { %478 = vmatprep.subr.mxu0 %v44_v8  ;;  %505 = vmatprep.subr.mxu1 %v150_v11  ;;  %v254_v34 = vld [vmem:[%s710_s5 + $0x28] sm:$0xff]  ;;  %v253_v35 = vld [vmem:[%s710_s5 + $0x20] sm:$0xff]  ;;  %v252_v36 = vld [vmem:[%s710_s5 + $0x18] sm:$0xff] }
   0xd   :  { %479 = vmatpush3.msra.mxu0 %v44_v8  ;;  %506 = vmatpush3.msra.mxu1 %v150_v11  ;;  %v251_v37 = vld [vmem:[%s710_s5 + $0x10] sm:$0xff]  ;;  %v250_v38 = vld [vmem:[%s710_s5 + $0x8] sm:$0xff]  ;;  %v249_v39 = vld [vmem:[%s710_s5] sm:$0xff] }
   0xe   :  { %480 = vmatprep.subr.mxu0 %v43_v10  ;;  %507 = vmatprep.subr.mxu1 %v149_v13  ;;  %v424_v40 = vld [vmem:[%s709_s4] ss:$0 sm:$0xff] }
   0xf   :  { %481 = vmatpush3.msra.mxu0 %v43_v10  ;;  %508 = vmatpush3.msra.mxu1 %v149_v13  ;;  %v428_v47 = vld [vmem:[%s711_s6] ss:$0 sm:$0xff] }
  0x10   :  { %482 = vmatprep.subr.mxu0 %v42_v12  ;;  %509 = vmatprep.subr.mxu1 %v148_v15  ;;  %v432_v54 = vld [vmem:[%s712_s7] ss:$0 sm:$0xff] }
  0x11   :  { %483 = vmatpush3.msra.mxu0 %v42_v12  ;;  %510 = vmatpush3.msra.mxu1 %v148_v15  ;;  %v433_v59 = vld [vmem:[#allocation2] ss:$0 sm:$0xff] }
  0x12   :  { %484 = vmatprep.subr.mxu0 %v41_v14  ;;  %511 = vmatprep.subr.mxu1 %v147_v22 }
  0x13   :  { %485 = vmatpush3.msra.mxu0 %v41_v14  ;;  %512 = vmatpush3.msra.mxu1 %v147_v22 }
  0x14   :  { %486 = vmatprep.subr.mxu0 %v40_v16  ;;  %513 = vmatprep.subr.mxu1 %v146_v23 }
  0x15   :  { %487 = vmatpush3.msra.mxu0 %v40_v16  ;;  %514 = vmatpush3.msra.mxu1 %v146_v23 }
  0x16   :  { %488 = vmatprep.subr.mxu0 %v39_v17  ;;  %515 = vmatprep.subr.mxu1 %v145_v24 }
  0x17   :  { %489 = vmatpush3.msra.mxu0 %v39_v17  ;;  %516 = vmatpush3.msra.mxu1 %v145_v24 }
  0x18   :  { %490 = vmatprep.subr.mxu0 %v38_v18  ;;  %517 = vmatprep.subr.mxu1 %v144_v25 }
  0x19   :  { %491 = vmatpush3.msra.mxu0 %v38_v18  ;;  %518 = vmatpush3.msra.mxu1 %v144_v25 }
  0x1a   :  { %492 = vmatprep.subr.mxu0 %v37_v19  ;;  %522 = vmatprep.subr.msk.mxu1 %vm270_vm3, %v255_v26 }
  0x1b   :  { %493 = vmatpush3.msra.mxu0 %v37_v19 }
  0x1c   :  { %494 = vmatprep.subr.mxu0 %v36_v20 }
  0x1d   :  { %495 = vmatpush3.msra.mxu0 %v36_v20 }
  0x1e   :  { %497 = vmatmul.mubr.msk.f32.vlgmr.msra.gmra.mxu0 %vm56_vm1, %v35_v21 }
  0xde   :  { %v498_v28 = vpop.f32.mrf.mxu0 }
  0xdf   :  { %v139_v29 = vadd.f32 %v498_v28, %v420_v27 }
  0xe0   :  { %v133_v30 = vpop.f32.mrf.mxu0 }
  0xe1   :  { %v134_v31 = vadd.f32 %v420_v27, %v133_v30  ;;  %v143_v33 = vmax.f32 %v139_v29, 0.0 }
  0xe3   :  { %v142_v32 = vmax.f32 %v134_v31, 0.0 }
  0xe5   :  { %519 = vmatprep.mubr.msk.f32.mxu1 %vm161_vm4, %v142_v32 }
  0xe6   :  { %520 = vmatmul.mubr.msk.f32.vlgmr.msra.gmra.mxu1 %vm161_vm4, %v143_v33 }
  0xe7   :  { %523 = vmatpush3.msk.msra.mxu1 %vm270_vm3, %v255_v26 }
  0xe8   :  { %524 = vmatprep.subr.mxu1 %v254_v34 }
  0xe9   :  { %525 = vmatpush3.msra.mxu1 %v254_v34 }
  0xea   :  { %526 = vmatprep.subr.mxu1 %v253_v35 }
  0xeb   :  { %527 = vmatpush3.msra.mxu1 %v253_v35 }
  0xec   :  { %528 = vmatprep.subr.mxu1 %v252_v36 }
  0xed   :  { %529 = vmatpush3.msra.mxu1 %v252_v36 }
  0xee   :  { %530 = vmatprep.subr.mxu1 %v251_v37 }
  0xef   :  { %531 = vmatpush3.msra.mxu1 %v251_v37 }
  0xf0   :  { %532 = vmatprep.subr.mxu1 %v250_v38 }
  0xf1   :  { %533 = vmatpush3.msra.mxu1 %v250_v38 }
  0xf2   :  { %534 = vmatprep.subr.mxu1 %v249_v39 }
  0xf3   :  { %535 = vmatpush3.msra.mxu1 %v249_v39 }
 0x1a6   :  { %v521_v41 = vpop.f32.mrf.mxu1 }
 0x1a7   :  { %v244_v42 = vadd.f32 %v521_v41, %v424_v40 }
 0x1a8   :  { %v238_v43 = vpop.f32.mrf.mxu1 }
 0x1a9   :  { %v239_v44 = vadd.f32 %v424_v40, %v238_v43  ;;  %v248_v46 = vmax.f32 %v244_v42, 0.0 }
 0x1ab   :  { %v247_v45 = vmax.f32 %v239_v44, 0.0 }
 0x1ad   :  { %536 = vmatprep.mubr.msk.f32.mxu1 %vm263_vm5, %v247_v45 }
 0x1ae   :  { %537 = vmatmul.mubr.msk.f32.vlgmr.msra.gmra.mxu1 %vm263_vm5, %v248_v46 }
 0x26e   :  { %v538_v48 = vpop.f32.mrf.mxu1 }
 0x26f   :  { %v346_v49 = vadd.f32 %v538_v48, %v428_v47 }
 0x270   :  { %v340_v50 = vpop.f32.mrf.mxu1 }
 0x271   :  { %v341_v51 = vadd.f32 %v428_v47, %v340_v50  ;;  %v350_v52 = vmax.f32 %v346_v49, 0.0 }
 0x273   :  { %v349_v53 = vmax.f32 %v341_v51, 0.0  ;;  %v359_v57 = vmul.f32 %v432_v54, %v350_v52 }
 0x275   :  { %v358_v55 = vmul.f32 %v432_v54, %v349_v53  ;;  %v364_v58 = vsel %vm360_vm6, %v359_v57, 0.0 }
 0x277   :  { %v361_v56 = vsel %vm360_vm6, %v358_v55, 0.0 }
 0x278   :  { %362 = vadd.xlane.f32.xlu0 %v361_v56 }
 0x27c   :  { %365 = vadd.xlane.f32.xlu0 %v364_v58 }
 0x301   :  { %v363_v60 = vpop.xlane.xlu0 %362 }
 0x302   :  { %v374_v61 = vadd.f32 %v433_v59, %v363_v60 }
 0x304   :  { %377 = vst.msk [vmem:[#allocation3] sm:$0xff] %vm376_vm7, %v374_v61 }
 0x305   :  { %v366_v62 = vpop.xlane.xlu0 %365 }
 0x30b   :  { %v409_v63 = vld [vmem:[#allocation3] sm:$0xff] }
 0x30c   :  { %410 = vst [vmem:[%s714_s9] sm:$0xff] %v409_v63 }

</bundles_post_ra>
